<compile_context>
chip_gen: v5e
topology: v5e:2x2
jax: 0.10.0
libtpu: 0.0.40
codegen_flags: <defaults>
</compile_context>

<pallas_src>
import functools

import jax
import jax.numpy as jnp
import numpy as np
from jax.experimental import pallas as pl
from jax.experimental.pallas import tpu as pltpu


# ---------------------------------------------------------------------------
# Fused kernel: pixel-norm (layer 0 only) + chained dense/wscale/lrelu layers.
# ---------------------------------------------------------------------------
def _mapping_kernel(z_ref, wt_ref, b_ref, out_ref, w_acc, *, eps, neg_slope):
    # z_ref:   (TB, D)      batch tile of latents (read at layer 0 only)
    # wt_ref:  (1, D, D)    this layer's pre-transposed, pre-scaled weight
    # b_ref:   (1, 1, D)    this layer's pre-scaled bias
    # out_ref: (TB, D)      written at the last layer only
    # w_acc:   (TB, D) f32  VMEM scratch carrying the activation across layers
    l = pl.program_id(1)

    @pl.when(l == 0)
    def _init():
        z = z_ref[...].astype(jnp.float32)
        inv = jax.lax.rsqrt(jnp.mean(z * z, axis=1, keepdims=True) + eps)
        w_acc[...] = z * inv                                   # PixelNormLayer

    h = jnp.dot(w_acc[...], wt_ref[0],
                preferred_element_type=jnp.float32,
                precision=jax.lax.Precision.HIGHEST)           # MXU
    h = h + b_ref[0]                                           # WScale bias
    w_acc[...] = jnp.where(h >= 0.0, h, h * neg_slope)         # LeakyReLU(0.2)

    @pl.when(l == pl.num_programs(1) - 1)
    def _finalize():
        out_ref[...] = w_acc[...].astype(out_ref.dtype)


# ---------------------------------------------------------------------------
# Wrapper reproducing MappingModule.forward
# ---------------------------------------------------------------------------
def mapping_forward(z, weights, biases, *,
                    gain=np.sqrt(2.0), lr_multiplier=0.01,
                    eps=1e-8, neg_slope=0.2, batch_tile=256):
    """z: (N, D), weights: (L, D, D) as stored by nn.Linear (out, in),
    biases: (L, D).  Requires equal in/out dims across layers (the default
    MappingModule config: 512 -> 512 x 8)."""
    L, out_dim, in_dim = weights.shape
    assert out_dim == in_dim and z.shape[1] == in_dim, (
        "fused kernel assumes equal layer dims (default MappingModule config)")
    # TODO(synk): support mixed per-layer dims by padding weights to max dim.
    D = in_dim
    N = z.shape[0]

    # Fold the WScale constant into the (transposed) weight and lr_multiplier
    # into the bias -- exact, since everything up to wscale is linear.
    scale = gain / np.sqrt(D) * lr_multiplier
    wt = (jnp.transpose(weights, (0, 2, 1)).astype(jnp.float32)
          * jnp.float32(scale))                                  # (L, D, D)
    b = (biases.astype(jnp.float32)
         * jnp.float32(lr_multiplier)).reshape(L, 1, D)          # (L, 1, D)

    # Pad batch to a sublane-friendly multiple of 8 and pick the tile size.
    tb = min(int(batch_tile), max(8, -(-N // 8) * 8))
    n_pad = -(-N // tb) * tb
    z_p = z.astype(jnp.float32)
    if n_pad != N:
        z_p = jnp.pad(z_p, ((0, n_pad - N), (0, 0)))

    grid = (n_pad // tb, L)
    out = pl.pallas_call(
        functools.partial(_mapping_kernel, eps=eps, neg_slope=neg_slope),
        out_shape=jax.ShapeDtypeStruct((n_pad, D), jnp.float32),
        grid_spec=pltpu.PrefetchScalarGridSpec(
            num_scalar_prefetch=0,
            grid=grid,
            in_specs=[
                pl.BlockSpec((tb, D), lambda bt, l: (bt, 0)),     # z tile
                pl.BlockSpec((1, D, D), lambda bt, l: (l, 0, 0)),  # layer weight
                pl.BlockSpec((1, 1, D), lambda bt, l: (l, 0, 0)),  # layer bias
            ],
            out_specs=pl.BlockSpec((tb, D), lambda bt, l: (bt, 0)),
            scratch_shapes=[pltpu.VMEM((tb, D), jnp.float32)],
        ),
        compiler_params=pltpu.CompilerParams(
            dimension_semantics=("parallel", "arbitrary")),
    )(z_p, wt, b)
    return out[:N]


if __name__ == "__main__":
    # Small, module-consistent shapes: batch=8 latents, dim=128, 8 layers.
    N, D, L = 8, 128, 8

    key = jax.random.PRNGKey(0)
    kz, kw, kb = jax.random.split(key, 3)

    z = jax.random.normal(kz, (N, D), dtype=jnp.float32)
    # Scale weights so post-wscale activations stay O(1) through the chain.
    weights = jax.random.normal(kw, (L, D, D), dtype=jnp.float32) * 8.0
    biases = jax.random.normal(kb, (L, D), dtype=jnp.float32) * 0.1

    out = mapping_forward(z, weights, biases)
    out = jax.block_until_ready(out)

    # Pure float64 numpy reference of the PyTorch module math.
    gain, lr_mult, eps, slope = np.sqrt(2.0), 0.01, 1e-8, 0.2
    z64 = np.asarray(z, dtype=np.float64)
    w64 = np.asarray(weights, dtype=np.float64)
    b64 = np.asarray(biases, dtype=np.float64)
    ref = z64 / np.sqrt(np.mean(z64 * z64, axis=1, keepdims=True) + eps)
    for i in range(L):
        h = ref @ w64[i].T
        h = h * (gain / np.sqrt(D) * lr_mult) + b64[i][None, :] * lr_mult
        ref = np.where(h >= 0.0, h, h * slope)

    np.testing.assert_allclose(np.asarray(out), ref, rtol=5e-4, atol=5e-5)
    print("KERNEL_OK")
</pallas_src>

<mosaic_0001>
module attributes {stable_mosaic.version = 11 : i64} {
  func.func @_mapping_kernel(%arg0: i32, %arg1: i32, %arg2: memref<8x128xf32, #tpu.memory_space<vmem>>, %arg3: memref<1x128x128xf32, #tpu.memory_space<vmem>>, %arg4: memref<1x1x128xf32, #tpu.memory_space<vmem>>, %arg5: memref<8x128xf32, #tpu.memory_space<vmem>>, %arg6: memref<8x128xf32, #tpu.memory_space<vmem>>) attributes {dimension_semantics = [#tpu.dimension_semantics<parallel>, #tpu.dimension_semantics<arbitrary>], iteration_bounds = array<i64: 1, 8>, scalar_prefetch = 0 : i64, scratch_operands = 1 : i64, tpu.core_type = #tpu.core_type<tc>, window_params = [{transform_indices = @transform_0, window_bounds = array<i64: 8, 128>}, {transform_indices = @transform_1, window_bounds = array<i64: 1, 128, 128>}, {transform_indices = @transform_2, window_bounds = array<i64: 1, 1, 128>}, {transform_indices = @transform_3, window_bounds = array<i64: 8, 128>}]} {
    %c0_i32 = arith.constant 0 : i32
    %0 = arith.cmpi eq, %arg1, %c0_i32 : i32
    %1 = arith.extui %0 : i1 to i32
    %c0_i32_0 = arith.constant 0 : i32
    %2 = arith.cmpi ne, %1, %c0_i32_0 : i32
    scf.if %2 {
      %c0_13 = arith.constant 0 : index
      %c0_14 = arith.constant 0 : index
      %20 = vector.load %arg2[%c0_13, %c0_14] : memref<8x128xf32, #tpu.memory_space<vmem>>, vector<8x128xf32>
      %21 = arith.mulf %20, %20 : vector<8x128xf32>
      %cst_15 = arith.constant dense<0.000000e+00> : vector<8xf32>
      %22 = vector.multi_reduction <add>, %21, %cst_15 [1] : vector<8x128xf32> to vector<8xf32>
      %23 = vector.shape_cast %22 : vector<8xf32> to vector<8x1xf32>
      %cst_16 = arith.constant 1.280000e+02 : f32
      %24 = vector.broadcast %cst_16 : f32 to vector<8x1xf32>
      %25 = arith.divf %23, %24 : vector<8x1xf32>
      %cst_17 = arith.constant 9.99999993E-9 : f32
      %26 = vector.broadcast %cst_17 : f32 to vector<8x1xf32>
      %27 = arith.addf %25, %26 : vector<8x1xf32>
      %28 = math.rsqrt %27 : vector<8x1xf32>
      %29 = vector.broadcast %28 : vector<8x1xf32> to vector<8x128xf32>
      %30 = arith.mulf %20, %29 : vector<8x128xf32>
      %c0_18 = arith.constant 0 : index
      %c0_19 = arith.constant 0 : index
      %31 = vector.load %arg6[%c0_18, %c0_19] : memref<8x128xf32, #tpu.memory_space<vmem>>, vector<8x128xf32>
      tpu.vector_store %arg6[%c0_18, %c0_19], %30 {strides = array<i32>} : memref<8x128xf32, #tpu.memory_space<vmem>>, vector<8x128xf32>,
    } else {
    }
    %c0 = arith.constant 0 : index
    %c0_1 = arith.constant 0 : index
    %3 = vector.load %arg6[%c0, %c0_1] : memref<8x128xf32, #tpu.memory_space<vmem>>, vector<8x128xf32>
    %c0_2 = arith.constant 0 : index
    %c0_3 = arith.constant 0 : index
    %c0_4 = arith.constant 0 : index
    %4 = vector.load %arg3[%c0_2, %c0_3, %c0_4] : memref<1x128x128xf32, #tpu.memory_space<vmem>>, vector<1x128x128xf32>
    %5 = vector.shape_cast %4 : vector<1x128x128xf32> to vector<128x128xf32>
    %cst = arith.constant dense<0.000000e+00> : vector<8x128xf32>
    %6 = tpu.matmul %3, %5, %cst {dimension_numbers = #tpu.dot_dimension_numbers<[1], [0], [0], [1], [0, 0, 1, 1], [], []>, precision = #tpu.contract_precision<fp32>} : vector<8x128xf32>, vector<128x128xf32>, vector<8x128xf32> -> vector<8x128xf32>
    %c0_5 = arith.constant 0 : index
    %c0_6 = arith.constant 0 : index
    %c0_7 = arith.constant 0 : index
    %7 = vector.load %arg4[%c0_5, %c0_6, %c0_7] : memref<1x1x128xf32, #tpu.memory_space<vmem>>, vector<1x1x128xf32>
    %8 = vector.shape_cast %7 : vector<1x1x128xf32> to vector<1x128xf32>
    %9 = vector.broadcast %8 : vector<1x128xf32> to vector<8x128xf32>
    %10 = arith.addf %6, %9 : vector<8x128xf32>
    %cst_8 = arith.constant 0.000000e+00 : f32
    %11 = vector.broadcast %cst_8 : f32 to vector<8x128xf32>
    %12 = arith.cmpf oge, %10, %11 : vector<8x128xf32>
    %cst_9 = arith.constant 2.000000e-01 : f32
    %13 = vector.broadcast %cst_9 : f32 to vector<8x128xf32>
    %14 = arith.mulf %10, %13 : vector<8x128xf32>
    %15 = arith.select %12, %10, %14 : vector<8x128xi1>, vector<8x128xf32>
    %c0_10 = arith.constant 0 : index
    %c0_11 = arith.constant 0 : index
    %16 = vector.load %arg6[%c0_10, %c0_11] : memref<8x128xf32, #tpu.memory_space<vmem>>, vector<8x128xf32>
    tpu.vector_store %arg6[%c0_10, %c0_11], %15 {strides = array<i32>} : memref<8x128xf32, #tpu.memory_space<vmem>>, vector<8x128xf32>,
    %c7_i32 = arith.constant 7 : i32
    %17 = arith.cmpi eq, %arg1, %c7_i32 : i32
    %18 = arith.extui %17 : i1 to i32
    %c0_i32_12 = arith.constant 0 : i32
    %19 = arith.cmpi ne, %18, %c0_i32_12 : i32
    scf.if %19 {
      %c0_13 = arith.constant 0 : index
      %c0_14 = arith.constant 0 : index
      %20 = vector.load %arg6[%c0_13, %c0_14] : memref<8x128xf32, #tpu.memory_space<vmem>>, vector<8x128xf32>
      %c0_15 = arith.constant 0 : index
      %c0_16 = arith.constant 0 : index
      %21 = vector.load %arg5[%c0_15, %c0_16] : memref<8x128xf32, #tpu.memory_space<vmem>>, vector<8x128xf32>
      tpu.vector_store %arg5[%c0_15, %c0_16], %20 {strides = array<i32>} : memref<8x128xf32, #tpu.memory_space<vmem>>, vector<8x128xf32>,
    } else {
    }
    return
  }
  func.func @transform_0(%arg0: i32, %arg1: i32) -> (i32, i32) {
    %c0_i32 = arith.constant 0 : i32
    %c0_i32_0 = arith.constant 0 : i32
    return %arg0, %c0_i32 : i32, i32
  }
  func.func @transform_1(%arg0: i32, %arg1: i32) -> (i32, i32, i32) {
    %c0_i32 = arith.constant 0 : i32
    %c0_i32_0 = arith.constant 0 : i32
    %c0_i32_1 = arith.constant 0 : i32
    return %arg1, %c0_i32, %c0_i32_0 : i32, i32, i32
  }
  func.func @transform_2(%arg0: i32, %arg1: i32) -> (i32, i32, i32) {
    %c0_i32 = arith.constant 0 : i32
    %c0_i32_0 = arith.constant 0 : i32
    %c0_i32_1 = arith.constant 0 : i32
    return %arg1, %c0_i32, %c0_i32_0 : i32, i32, i32
  }
  func.func @transform_3(%arg0: i32, %arg1: i32) -> (i32, i32) {
    %c0_i32 = arith.constant 0 : i32
    %c0_i32_0 = arith.constant 0 : i32
    return %arg0, %c0_i32 : i32, i32
  }
}

</mosaic_0001>

<bundles_post_ra>
// kernel: tpu_custom_call.1
= control target key start
LH: loop header
LB: loop body
LE: loop exit
PB: predicated region body
PF: predicated region fallthrough
CT: control target
= control target key end

     0   :  { %8 = vsyncpa [#allocation4], 0  ;;  %s1452_s0 = inlined_call_operand.hbm [shape: f32[8,128], index: 0, kind: input, shape index: {}]   ;;  %s1453_s1 = inlined_call_operand.hbm [shape: f32[8,128,128], index: 1, kind: input, shape index: {}]   ;;  %s1454_s2 = inlined_call_operand.hbm [shape: f32[8,1,128], index: 2, kind: input, shape index: {}]   ;;  %s1455_s3 = inlined_call_operand.hbm [shape: f32[8,128], index: 3, kind: output, shape index: {}]  }
   0x1   :  { %9 = vsyncpa [#allocation7], 0 }
   0x2   :  { %11 = vsyncpa [#allocation7 + $0x1], 0 }
   0x3   :  { %12 = vsyncpa [#allocation5], 0  ;;  %s1059_s12 = smov 0   ;;  %s1061_s13 = smov 0  }
   0x4   :  { %s1063_s14 = smov 0   ;;  %s1065_s15 = smov 0  }
   0x5   :  { %s1067_s16 = smov 0   ;;  %s1069_s17 = smov 0  }
   0x6 LB: > { %s27_s18 = sadd.s32 1, %s1028_s16  ;;  %s63_s19 = sadd.s32 1, %s1020_s14  ;;  %s1032_s17 = sphi %s1069_s17, %s18_s17   ;;  %s1028_s16 = sphi %s1067_s16, %s1464_s16   ;;  %s1024_s15 = sphi %s1065_s15, %s1463_s15   ;;  %s1020_s14 = sphi %s1063_s14, %s1462_s14   ;;  %s1016_s13 = sphi %s1061_s13, %s1461_s13   ;;  %s1012_s12 = sphi %s1059_s12, %s1460_s12  }
   0x7   : > { %p28_p0 = scmp.ge.s32.totalorder %s27_s18, 8  ;;  %p70_p1 = scmp.ne.s32.totalorder %s1020_s14, %s1016_s13 }
   0x8   : > { %p71_p2 = scmp.eq.s32.totalorder %s1032_s17, 0  ;;  %p794_p4 = scmp.lt.s32.totalorder %s1032_s17, 8 }
   0x9   : > { %s1466_s18 = smov (%p28_p0, %s27_s18), 0  ;;  %s166_s22 = sand.u32 1, %s1032_s17  }
   0xa   : > { %p1096_p3 = por %p71_p2, %p70_p1  ;;  %s60_s21 = ssub.s32 %s1028_s16, %s1466_s18 }
   0xb   : > { %p61_p5 = scmp.eq.s32.totalorder %s60_s21, 0  ;;  %s168_s23 = sand.u32 1, %s1020_s14  }
   0xc   : > { %s769_s24 = sshll.u32 %s1028_s16, 7  ;;  %s757_s26 = sshll.u32 %s168_s23, 7 }
   0xd   : > { %s1107_s25 = scalar_select %p61_p5, %s1020_s14, %s63_s19  }
   0xe   : > { %s175_s29 = scalar_lea.hbm %s1453_s1, %s769_s24  ;;  %s170_s4 = scalar_lea.vmem [#allocation6], %s757_s26 }
   0xf   : > { %s176_s30 = sshll.u32 %s175_s29, 4  ;;  %s178_s5 = sshll.u32 %s170_s4, 4  ;;  %s177_s30 = int_to_ptr.hbm [resolvable:$true] %s176_s30  ;;  %s179_s5 = int_to_ptr.vmem [resolvable:$true] %s178_s5 }
  0x10   : > { %p1118_p6 = pnand %p794_p4, %p1096_p3  ;;  %s167_s7 = scalar_lea.sflag [#allocation7], %s166_s22 }
  0x11   : > { %s1034_s8 = smov 128   ;;  %s1035_s9 = smov 8  }
  0x12   : > { %789 = dma.hbm_to_vmem [thread:$0]  (!%p1118_p6), %s177_s30, 2048, %s179_s5, %s167_s7, %s1034_s8, %s1034_s8, %s1035_s9  }
  0x13   : > { %s1125_s10 = sadd.s32 4294967295, %s1032_s17   ;;  %p76_p7 = scmp.ne.s32.totalorder %s1016_s13, %s1012_s12 }
  0x14   : > { %p77_p8 = scmp.eq.s32.totalorder %s1125_s10, 0  ;;  %p754_p9 = scmp.ge.s32.totalorder %s1032_s17, 1 }
  0x15   : > { %p139_p10 = scmp.lt.s32.totalorder %s1032_s17, 9  ;;  %s153_s22 = sshll.u32 %s1452_s0, 4  ;;  %s154_s22 = int_to_ptr.hbm [resolvable:$true] %s153_s22 }
  0x16   : > { %p1134_p11 = por %p77_p8, %p76_p7  ;;  %s1036_s12 = smov [#allocation3]  }
  0x17   : > { %p1138_p12 = pnand %p754_p9, %p139_p10  ;;  %s155_s24 = sshll.u32 %s1036_s12, 4  ;;  %s156_s24 = int_to_ptr.vmem [resolvable:$true] %s155_s24 }
  0x18   : > { %s194_s28 = scalar_lea.hbm %s1454_s2, %s1028_s16  ;;  %s191_s30 = scalar_lea.vmem [#allocation8], %s168_s23 }
  0x19   : > { %p782_p13 = pneg %p1138_p12  ;;  %s196_s29 = sshll.u32 %s194_s28, 4  ;;  %s197_s29 = int_to_ptr.hbm [resolvable:$true] %s196_s29 }
  0x1a   : > { %s198_s4 = sshll.u32 %s191_s30, 4  ;;  %207 = sbr.rel (%p1138_p12) target bundleno = 407 (0x197), region = 32  ;;  %s199_s4 = int_to_ptr.vmem [resolvable:$true] %s198_s4 }
  0x1b   : > { %p783_p0 = pnand %p782_p13, %p77_p8 }
  0x1c   : > { %792 = dma.hbm_to_vmem [thread:$0]  (!%p1118_p6), %s197_s29, 16, %s199_s4, %s167_s7  }
  0x1d   : > { %785 = dma.hbm_to_vmem [thread:$0]  (!%p783_p0), %s154_s22, 128, %s156_s24, [#allocation4]  }
  0x1f   : > { %999 = dma.done.wait (%p77_p8), [#allocation4], 128  }
  0x20   : > { %1001 = vsyncadd (%p77_p8), [#allocation4], 4294967168  ;;  %s214_s5 = sand.u32 1, %s1125_s10   ;;  %s216_s23 = sand.u32 1, %s1016_s13  }
  0x21   : > { %s762_s8 = sshll.u32 %s216_s23, 7  ;;  %s215_s9 = scalar_lea.sflag [#allocation7], %s214_s5 }
  0x22   : > { %s1165_s20 = scalar_lea.vmem [#allocation6], %s762_s8 }
  0x23   : > { %1003 = dma.done.wait (%p1134_p11), %s215_s9, 2064  }
  0x24   : > { %1005 = vsyncadd (%p1134_p11), %s215_s9, 4294965232  ;;  %s1171_s6 = scalar_lea.vmem [#allocation8], %s216_s23  ;;  %p763_p1 = scmp.ne.s32.totalorder %s1024_s15, 0 }
  0x26   : > { %253 = sbr.rel (%p763_p1) target bundleno = 187 (0xbb), region = 48 }
  0x2b   : > { %v254_v0 = vld [vmem:[#allocation3] sm:$0xff]  ;;  %v1037_v2 = vmov 128.0  }
  0x2c   : > { %v255_v1 = vmul.f32 %v254_v0, %v254_v0  ;;  %851 = vrcp.f32 %v1037_v2 }
  0x2e   : > { %256 = vadd.xlane.f32.xlu0 %v255_v1 }
  0x32   : > { %v852_v3 = vpop.eup %851 }
  0x33   : > { %v259_v4 = vmul.f32 128.0, %v852_v3  ;;  %vm263_vm0 = vweird.f32 %v852_v3 }
  0x35   : > { %v260_v5 = vsub.f32 1.0, %v259_v4 }
  0x37   : > { %v261_v6 = vmul.f32 %v852_v3, %v260_v5 }
  0x39   : > { %v262_v7 = vadd.f32 %v852_v3, %v261_v6 }
  0x3b   : > { %v264_v8 = vsel %vm263_vm0, %v852_v3, %v262_v7 }
  0xa1   : > { %v257_v9 = vpop.xlane.xlu0 %256 }
  0xa2   : > { %v265_v10 = vmul.f32 %v264_v8, %v257_v9 }
  0xa4   : > { %v266_v11 = vadd.f32 1e-08, %v265_v10 }
  0xa6   : > { %853 = vrsqrt.f32 %v266_v11  ;;  %vm273_vm2 = vweird.f32 %v266_v11 }
  0xac   : > { %v854_v12 = vpop.eup %853 }
  0xad   : > { %v268_v13 = vmul.f32 %v854_v12, %v266_v11  ;;  %vm274_vm1 = vweird.f32 %v854_v12 }
  0xae   : > { %vm275_vm3 = vmor %vm273_vm2, %vm274_vm1 }
  0xaf   : > { %v269_v14 = vmul.f32 %v854_v12, %v268_v13 }
  0xb1   : > { %v270_v15 = vmul.f32 0.5, %v269_v14 }
  0xb3   : > { %v271_v16 = vsub.f32 1.5, %v270_v15 }
  0xb5   : > { %v272_v17 = vmul.f32 %v854_v12, %v271_v16 }
  0xb7   : > { %v276_v18 = vsel %vm275_vm3, %v854_v12, %v272_v17 }
  0xb8   : > { %v277_v19 = vmul.f32 %v276_v18, %v254_v0 }
  0xba   : > { %278 = vst [vmem:[#allocation2] sm:$0xff] %v277_v19 }
  0xbb PF: > { %v295_v20 = vld [vmem:[%s1165_s20 + $0x78] sm:$0xff]  ;;  %v294_v21 = vld [vmem:[%s1165_s20 + $0x70] sm:$0xff]  ;;  %v293_v22 = vld [vmem:[%s1165_s20 + $0x68] sm:$0xff]  ;;  %p764_p2 = scmp.ne.s32.totalorder %s1024_s15, 7 }
  0xbc   : > { %v1177_v23 = vand.u32 4294901760, %v295_v20  ;;  %v1179_v24 = vand.u32 4294901760, %v294_v21  ;;  %v1181_v25 = vand.u32 4294901760, %v293_v22  ;;  %v292_v26 = vld [vmem:[%s1165_s20 + $0x60] sm:$0xff]  ;;  %v291_v27 = vld [vmem:[%s1165_s20 + $0x58] sm:$0xff]  ;;  %v290_v28 = vld [vmem:[%s1165_s20 + $0x50] sm:$0xff] }
  0xbd   : > { %v1186_v29 = vand.u32 4294901760, %v292_v26  ;;  %v1188_v30 = vand.u32 4294901760, %v291_v27  ;;  %v1190_v31 = vand.u32 4294901760, %v290_v28  ;;  %v289_v32 = vld [vmem:[%s1165_s20 + $0x48] sm:$0xff]  ;;  %v288_v33 = vld [vmem:[%s1165_s20 + $0x40] sm:$0xff]  ;;  %v287_v41 = vld [vmem:[%s1165_s20 + $0x38] sm:$0xff] }
  0xbe   : > { %301 = vmatpush.msra.mxu0 %v1177_v23  ;;  %v1196_v34 = vsub.f32 %v295_v20, %v1177_v23  ;;  %v1199_v35 = vsub.f32 %v294_v21, %v1179_v24  ;;  %v1202_v36 = vsub.f32 %v293_v22, %v1181_v25  ;;  %v1204_v37 = vand.u32 4294901760, %v289_v32  ;;  %497 = vmatpush.msra.mxu3 %v1177_v23  ;;  %v286_v54 = vld [vmem:[%s1165_s20 + $0x30] sm:$0xff]  ;;  %v285_v55 = vld [vmem:[%s1165_s20 + $0x28] sm:$0xff]  ;;  %v284_v62 = vld [vmem:[%s1165_s20 + $0x20] sm:$0xff] }
  0xbf   : > { %v1208_v38 = vsub.f32 %v292_v26, %v1186_v29  ;;  %v1211_v39 = vsub.f32 %v291_v27, %v1188_v30  ;;  %v1213_v40 = vand.u32 4294901760, %v288_v33  ;;  %v1221_v45 = vsub.f32 %v290_v28, %v1190_v31  ;;  %v283_v3 = vld [vmem:[%s1165_s20 + $0x18] sm:$0xff]  ;;  %v282_v9 = vld [vmem:[%s1165_s20 + $0x10] sm:$0xff]  ;;  %v281_v17 = vld [vmem:[%s1165_s20 + $0x8] sm:$0xff] }
  0xc0   : > { %303 = vmatpush.msra.mxu0 %v1179_v24  ;;  %v343_v42 = vand.u32 4294901760, %v1196_v34  ;;  %v349_v43 = vand.u32 4294901760, %v1199_v35  ;;  %v355_v44 = vand.u32 4294901760, %v1202_v36  ;;  %444 = vmatpush.msra.mxu2 %v1196_v34  ;;  %v1227_v48 = vsub.f32 %v289_v32, %v1204_v37  ;;  %v280_v22 = vld [vmem:[%s1165_s20] sm:$0xff] }
  0xc1   : > { %v361_v46 = vand.u32 4294901760, %v1208_v38  ;;  %v367_v47 = vand.u32 4294901760, %v1211_v39  ;;  %499 = vmatpush.msra.mxu3 %v1179_v24  ;;  %v1240_v52 = vand.u32 4294901760, %v287_v41  ;;  %v1244_v53 = vsub.f32 %v288_v33, %v1213_v40 }
  0xc2   : > { %v344_v49 = vsub.f32 %v1196_v34, %v343_v42  ;;  %305 = vmatpush.msra.mxu0 %v1181_v25  ;;  %v350_v50 = vsub.f32 %v1199_v35, %v349_v43  ;;  %v356_v51 = vsub.f32 %v1202_v36, %v355_v44  ;;  %447 = vmatpush.msra.mxu2 %v1199_v35  ;;  %v373_v59 = vand.u32 4294901760, %v1221_v45 }
  0xc3   : > { %501 = vmatpush.msra.mxu3 %v1181_v25  ;;  %v362_v58 = vsub.f32 %v1208_v38, %v361_v46  ;;  %v368_v60 = vsub.f32 %v1211_v39, %v367_v47  ;;  %v379_v61 = vand.u32 4294901760, %v1227_v48  ;;  %v1262_v0 = vand.u32 4294901760, %v286_v54 }
  0xc4   : > { %v345_v56 = vand.u32 4294901760, %v344_v49  ;;  %v351_v57 = vand.u32 4294901760, %v350_v50  ;;  %307 = vmatpush.msra.mxu0 %v1186_v29  ;;  %450 = vmatpush.msra.mxu2 %v1202_v36  ;;  %v357_v63 = vand.u32 4294901760, %v356_v51  ;;  %v1265_v1 = vsub.f32 %v287_v41, %v1240_v52  ;;  %v279_v49 = vld [vmem:[#allocation2] sm:$0xff] }
  0xc5   : > { %503 = vmatpush.msra.mxu3 %v1186_v29  ;;  %v1267_v2 = vand.u32 4294901760, %v285_v55  ;;  %v385_v4 = vand.u32 4294901760, %v1244_v53  ;;  %v363_v5 = vand.u32 4294901760, %v362_v58  ;;  %v374_v6 = vsub.f32 %v1221_v45, %v373_v59 }
  0xc6   : > { %346 = vmatpush.msra.mxu1 %v345_v56  ;;  %309 = vmatpush.msra.mxu0 %v1188_v30  ;;  %v1278_v7 = vsub.f32 %v286_v54, %v1262_v0  ;;  %v1280_v8 = vand.u32 4294901760, %v284_v62  ;;  %v1283_v10 = vand.u32 4294901760, %v283_v3  ;;  %v369_v11 = vand.u32 4294901760, %v368_v60 }
  0xc7   : > { %453 = vmatpush.msra.mxu2 %v1208_v38  ;;  %505 = vmatpush.msra.mxu3 %v1188_v30  ;;  %v380_v12 = vsub.f32 %v1227_v48, %v379_v61  ;;  %v391_v13 = vand.u32 4294901760, %v1265_v1  ;;  %v1293_v14 = vsub.f32 %v285_v55, %v1267_v2  ;;  %v386_v15 = vsub.f32 %v1244_v53, %v385_v4 }
  0xc8   : > { %352 = vmatpush.msra.mxu1 %v351_v57  ;;  %311 = vmatpush.msra.mxu0 %v1190_v31  ;;  %v1298_v16 = vand.u32 4294901760, %v282_v9  ;;  %v375_v18 = vand.u32 4294901760, %v374_v6  ;;  %v397_v19 = vand.u32 4294901760, %v1278_v7  ;;  %v1306_v20 = vsub.f32 %v284_v62, %v1280_v8 }
  0xc9   : > { %456 = vmatpush.msra.mxu2 %v1211_v39  ;;  %507 = vmatpush.msra.mxu3 %v1190_v31  ;;  %v1309_v21 = vsub.f32 %v283_v3, %v1283_v10  ;;  %v381_v26 = vand.u32 4294901760, %v380_v12  ;;  %v392_v27 = vsub.f32 %v1265_v1, %v391_v13  ;;  %v403_v28 = vand.u32 4294901760, %v1293_v14 }
  0xca   : > { %358 = vmatpush.msra.mxu1 %v357_v63  ;;  %313 = vmatpush.msra.mxu0 %v1204_v37  ;;  %v1319_v32 = vand.u32 4294901760, %v281_v17  ;;  %v387_v33 = vand.u32 4294901760, %v386_v15  ;;  %v1322_v41 = vsub.f32 %v282_v9, %v1298_v16  ;;  %v398_v50 = vsub.f32 %v1278_v7, %v397_v19 }
  0xcb   : > { %459 = vmatpush.msra.mxu2 %v1221_v45  ;;  %509 = vmatpush.msra.mxu3 %v1204_v37  ;;  %v409_v51 = vand.u32 4294901760, %v1306_v20  ;;  %v1331_v54 = vand.u32 4294901760, %v280_v22  ;;  %v1333_v55 = vand.u32 4294901760, %v279_v49  ;;  %v415_v56 = vand.u32 4294901760, %v1309_v21 }
  0xcc   : > { %364 = vmatpush.msra.mxu1 %v363_v5  ;;  %315 = vmatpush.msra.mxu0 %v1213_v40  ;;  %v393_v57 = vand.u32 4294901760, %v392_v27  ;;  %v404_v58 = vsub.f32 %v1293_v14, %v403_v28  ;;  %v1343_v60 = vsub.f32 %v281_v17, %v1319_v32  ;;  %v399_v63 = vand.u32 4294901760, %v398_v50 }
  0xcd   : > { %462 = vmatpush.msra.mxu2 %v1227_v48  ;;  %511 = vmatpush.msra.mxu3 %v1213_v40  ;;  %v333_v62 = vsub.f32 %v279_v49, %v1333_v55  ;;  %v410_v3 = vsub.f32 %v1306_v20, %v409_v51  ;;  %v421_v5 = vand.u32 4294901760, %v1322_v41  ;;  %v1354_v6 = vsub.f32 %v280_v22, %v1331_v54 }
  0xce   : > { %370 = vmatpush.msra.mxu1 %v369_v11  ;;  %317 = vmatpush.msra.mxu0 %v1240_v52  ;;  %v405_v9 = vand.u32 4294901760, %v404_v58  ;;  %v416_v11 = vsub.f32 %v1309_v21, %v415_v56  ;;  %v427_v12 = vand.u32 4294901760, %v1343_v60 }
  0xcf   : > { %465 = vmatpush.msra.mxu2 %v1244_v53  ;;  %513 = vmatpush.msra.mxu3 %v1240_v52  ;;  %v334_v15 = vand.u32 4294901760, %v333_v62  ;;  %v411_v17 = vand.u32 4294901760, %v410_v3  ;;  %v433_v22 = vand.u32 4294901760, %v1354_v6 }
  0xd0   : > { %376 = vmatpush.msra.mxu1 %v375_v18  ;;  %319 = vmatpush.msra.mxu0 %v1262_v0  ;;  %v422_v18 = vsub.f32 %v1322_v41, %v421_v5  ;;  %v428_v27 = vsub.f32 %v1343_v60, %v427_v12 }
  0xd1   : > { %468 = vmatpush.msra.mxu2 %v1265_v1  ;;  %515 = vmatpush.msra.mxu3 %v1262_v0  ;;  %v434_v50 = vsub.f32 %v1354_v6, %v433_v22 }
  0xd2   : > { %382 = vmatpush.msra.mxu1 %v381_v26  ;;  %321 = vmatpush.msra.mxu0 %v1267_v2  ;;  %v417_v26 = vand.u32 4294901760, %v416_v11  ;;  %v423_v49 = vand.u32 4294901760, %v422_v18 }
  0xd3   : > { %471 = vmatpush.msra.mxu2 %v1278_v7  ;;  %517 = vmatpush.msra.mxu3 %v1267_v2 }
  0xd4   : > { %388 = vmatpush.msra.mxu1 %v387_v33  ;;  %323 = vmatpush.msra.mxu0 %v1280_v8  ;;  %v335_v33 = vsub.f32 %v333_v62, %v334_v15 }
  0xd5   : > { %474 = vmatpush.msra.mxu2 %v1293_v14  ;;  %519 = vmatpush.msra.mxu3 %v1280_v8 }
  0xd6   : > { %394 = vmatpush.msra.mxu1 %v393_v57  ;;  %325 = vmatpush.msra.mxu0 %v1283_v10  ;;  %v429_v57 = vand.u32 4294901760, %v428_v27  ;;  %v336_v58 = vand.u32 4294901760, %v335_v33 }
  0xd7   : > { %477 = vmatpush.msra.mxu2 %v1306_v20  ;;  %521 = vmatpush.msra.mxu3 %v1283_v10 }
  0xd8   : > { %400 = vmatpush.msra.mxu1 %v399_v63  ;;  %327 = vmatpush.msra.mxu0 %v1298_v16  ;;  %v435_v63 = vand.u32 4294901760, %v434_v50 }
  0xd9   : > { %480 = vmatpush.msra.mxu2 %v1309_v21  ;;  %523 = vmatpush.msra.mxu3 %v1298_v16 }
  0xda   : > { %406 = vmatpush.msra.mxu1 %v405_v9  ;;  %329 = vmatpush.msra.mxu0 %v1319_v32 }
  0xdb   : > { %483 = vmatpush.msra.mxu2 %v1322_v41  ;;  %525 = vmatpush.msra.mxu3 %v1319_v32 }
  0xdc   : > { %412 = vmatpush.msra.mxu1 %v411_v17  ;;  %331 = vmatpush.msra.mxu0 %v1331_v54 }
  0xdd   : > { %486 = vmatpush.msra.mxu2 %v1343_v60  ;;  %527 = vmatpush.msra.mxu3 %v1331_v54 }
  0xde   : > { %538 = vmatpush.msrb.mxu0 %v343_v42  ;;  %418 = vmatpush.msra.mxu1 %v417_v26 }
  0xdf   : > { %489 = vmatpush.msra.mxu2 %v1354_v6  ;;  %531 = vmatmul.f32.vlgmr.msra.gmra.mxu3 %v334_v15 }
  0xe0   : > { %542 = vmatpush.msrb.mxu0 %v349_v43  ;;  %424 = vmatpush.msra.mxu1 %v423_v49 }
  0xe1   : > { %492 = vmatmul.f32.vlgmr.msra.gmra.mxu2 %v333_v62  ;;  %337 = vmatmul.f32.vlgmr.msra.gmra.mxu0 %v336_v58 }
  0xe2   : > { %546 = vmatpush.msrb.mxu0 %v355_v44  ;;  %430 = vmatpush.msra.mxu1 %v429_v57 }
  0xe4   : > { %550 = vmatpush.msrb.mxu0 %v361_v46  ;;  %436 = vmatpush.msra.mxu1 %v435_v63 }
  0xe5   : > { %438 = vmatmul.f32.vlgmr.msra.gmra.mxu1 %v1333_v55 }
  0xe6   : > { %605 = vmatpush.msrb.mxu1 %v1177_v23  ;;  %554 = vmatpush.msrb.mxu0 %v367_v47  ;;  %v855_v23 = vld [vmem:[%s1171_s6] ss:$0 sm:$0xff] }
  0xe8   : > { %607 = vmatpush.msrb.mxu1 %v1179_v24  ;;  %558 = vmatpush.msrb.mxu0 %v373_v59 }
  0xea   : > { %609 = vmatpush.msrb.mxu1 %v1181_v25  ;;  %562 = vmatpush.msrb.mxu0 %v379_v61 }
  0xec   : > { %611 = vmatpush.msrb.mxu1 %v1186_v29  ;;  %566 = vmatpush.msrb.mxu0 %v385_v4 }
  0xee   : > { %613 = vmatpush.msrb.mxu1 %v1188_v30  ;;  %570 = vmatpush.msrb.mxu0 %v391_v13 }
  0xf0   : > { %615 = vmatpush.msrb.mxu1 %v1190_v31  ;;  %574 = vmatpush.msrb.mxu0 %v397_v19 }
  0xf2   : > { %617 = vmatpush.msrb.mxu1 %v1204_v37  ;;  %578 = vmatpush.msrb.mxu0 %v403_v28 }
  0xf4   : > { %619 = vmatpush.msrb.mxu1 %v1213_v40  ;;  %582 = vmatpush.msrb.mxu0 %v409_v51 }
  0xf6   : > { %621 = vmatpush.msrb.mxu1 %v1240_v52  ;;  %586 = vmatpush.msrb.mxu0 %v415_v56 }
  0xf8   : > { %623 = vmatpush.msrb.mxu1 %v1262_v0  ;;  %590 = vmatpush.msrb.mxu0 %v421_v5 }
  0xfa   : > { %625 = vmatpush.msrb.mxu1 %v1267_v2  ;;  %594 = vmatpush.msrb.mxu0 %v427_v12 }
  0xfc   : > { %627 = vmatpush.msrb.mxu1 %v1280_v8  ;;  %598 = vmatpush.msrb.mxu0 %v433_v22 }
  0xfd   : > { %600 = vmatmul.f32.vlgmr.msrb.gmra.mxu0 %v1333_v55 }
  0xfe   : > { %629 = vmatpush.msrb.mxu1 %v1283_v10 }
 0x100   : > { %631 = vmatpush.msrb.mxu1 %v1298_v16 }
 0x102   : > { %633 = vmatpush.msrb.mxu1 %v1319_v32 }
 0x104   : > { %635 = vmatpush.msrb.mxu1 %v1331_v54 }
 0x105   : > { %637 = vmatmul.f32.vlgmr.msrb.gmra.mxu1 %v1333_v55 }
 0x15e   : > { %v338_v24 = vpop.f32.mrf.mxu0 }
 0x15f   : > { %v339_v25 = vadd.f32 %v855_v23, %v338_v24 }
 0x162   : > { %v439_v29 = vpop.f32.mrf.mxu1  ;;  %v532_v35 = vpop.f32.mrf.mxu3 }
 0x163   : > { %v440_v30 = vadd.f32 %v439_v29, %v339_v25 }
 0x164   : > { %v493_v31 = vpop.f32.mrf.mxu2 }
 0x165   : > { %v494_v34 = vadd.f32 %v493_v31, %v440_v30 }
 0x167   : > { %v533_v36 = vadd.f32 %v532_v35, %v494_v34 }
 0x17a   : > { %v601_v37 = vpop.f32.mrf.mxu0 }
 0x17b   : > { %v602_v38 = vadd.f32 %v601_v37, %v533_v36 }
 0x182   : > { %v638_v39 = vpop.f32.mrf.mxu1 }
 0x183   : > { %v639_v40 = vadd.f32 %v638_v39, %v602_v38 }
 0x184   : > { %648 = sbr.rel (%p764_p2) target bundleno = 401 (0x191), region = 52 }
 0x185   : > { %vm641_vm4 = vcmp.ge.f32.partialorder %v639_v40, 0.0  ;;  %v642_v42 = vmul.f32 0.2, %v639_v40 }
 0x187   : > { %v643_v43 = vsel %vm641_vm4, %v639_v40, %v642_v42 }
 0x188   : > { %644 = vst [vmem:[#allocation2] sm:$0xff] %v643_v43 }
 0x18f   : > { %v649_v44 = vld [vmem:[#allocation2] sm:$0xff] }
 0x190   : > { %650 = vst [vmem:[#allocation9] sm:$0xff] %v649_v44 }
 0x191 PF: > { %p796_p3 = scmp.eq.s32.totalorder %s1125_s10, 7  ;;  %s661_s19 = sshll.u32 %s1455_s3, 4  ;;  %s662_s19 = int_to_ptr.hbm [resolvable:$true] %s661_s19 }
 0x192   : > { %s1038_s21 = smov [#allocation9]  }
 0x193   : > { %s659_s22 = sshll.u32 %s1038_s21, 4  ;;  %s660_s22 = int_to_ptr.vmem [resolvable:$true] %s659_s22 }
 0x194   : > { %779 = dma.vmem_to_hbm [thread:$0]  (%p796_p3), %s660_s22, 128, %s662_s19, [#allocation5]  }
 0x195   : > { %1007 = dma.done.wait (%p796_p3), [#allocation5], 128  }
 0x196   : > { %1009 = vsyncadd (%p796_p3), [#allocation5], 4294967168 }
 0x197 PF: > { %s18_s17 = sadd.s32 1, %s1032_s17   ;;  %s1460_s12 = smov %s1016_s13 }
 0x198   : > { %p15_p4 = scmp.ge.s32.totalorder %s18_s17, 10   ;;  %s1461_s13 = smov %s1020_s14 }
 0x199   : > { %s1462_s14 = smov %s1107_s25  ;;  %s1463_s15 = smov %s1028_s16 }
 0x19a   : > { %s1464_s16 = smov %s1466_s18  ;;  %17 = sbr.rel (!%p15_p4) target bundleno = 6 (0x6), region = 95 }
 0x19f   :  { %675 = vsyncpa [#allocation4], 1 }
 0x1a0   :  { %677 = vsyncpa [#allocation4 + $0x1], 1 }
 0x1a1   :  { %678 = vsyncpa [#allocation7], 1 }
 0x1a2   :  { %680 = vsyncpa [#allocation7 + $0x1], 1 }
 0x1a3   :  { %681 = vsyncpa [#allocation5], 1 }
 0x1a4   :  { %683 = vsyncpa [#allocation5 + $0x1], 1 }

</bundles_post_ra>
